<compile_context>
chip_gen: v6e
topology: v6e:2x2x1
jax: 0.10.0
libtpu: 0.0.40
codegen_flags: <defaults>
</compile_context>

<pallas_src>
import functools

import jax
import jax.numpy as jnp
from jax import lax
from jax.experimental import pallas as pl
from jax.experimental.pallas import tpu as pltpu


# Set to jnp.bfloat16 on v6e/v7x for ~2x MXU throughput (f32 accumulation kept).
COMPUTE_DTYPE = None  # None -> keep float32 operands


_SQRT_2_OVER_PI = 0.7978845608028654


def _gelu_tanh(x):
    return 0.5 * x * (1.0 + jnp.tanh(_SQRT_2_OVER_PI * (x + 0.044715 * (x * x * x))))


# -----------------------------------------------------------------------------
# Fused Conv3x3 (as GEMM over im2col patches) + folded BN bias + optional GELU.
# -----------------------------------------------------------------------------
def _conv_gemm_bn_act_kernel(x_ref, w_ref, b_ref, o_ref, *, apply_gelu):
    """One grid step: out[Cout, TP] = W[Cout, K] @ patches[K, TP] + b, (GELU).

    x_ref: (1, K, TP)   im2col patches (K = 9*Cin on sublanes, spatial on lanes)
    w_ref: (Cout, K)    BN-folded conv weights
    b_ref: (Cout, 1)    fused conv-bias + BN shift
    o_ref: (1, Cout, TP)
    """
    acc = jnp.dot(w_ref[...], x_ref[0, :, :], preferred_element_type=jnp.float32)
    acc = acc + b_ref[...]                      # broadcast (Cout,1) over lanes
    if apply_gelu:
        acc = _gelu_tanh(acc)
    o_ref[0, :, :] = acc.astype(o_ref.dtype)


def _im2col_3x3_nchw(x, stride):
    """(N, C, H, W) -> (N, 9*C, Ho*Wo) patches for a 3x3 conv, pad=1.

    Row ordering is (c, ky, kx), matching PyTorch weight.reshape(Cout, Cin*9).
    """
    N, C, H, W = x.shape
    Ho = (H - 1) // stride + 1
    Wo = (W - 1) // stride + 1
    xp = jnp.pad(x, ((0, 0), (0, 0), (1, 1), (1, 1)))
    taps = []
    for dy in range(3):
        for dx in range(3):
            taps.append(
                lax.slice(
                    xp,
                    (0, 0, dy, dx),
                    (N, C, dy + (Ho - 1) * stride + 1, dx + (Wo - 1) * stride + 1),
                    (1, 1, stride, stride),
                ))
    pat = jnp.stack(taps, axis=2)               # (N, C, 9, Ho, Wo)
    return pat.reshape(N, C * 9, Ho * Wo), Ho, Wo


def _choose_p_tile(P):
    """Spatial (lane-axis) tile: full extent if small, else 512 (multiple of 128)."""
    if P <= 512:
        return P, P
    TP = 512
    return TP, pl.cdiv(P, TP) * TP


def conv3x3_bn_act(x, p, *, stride, apply_gelu, compute_dtype=None):
    """Conv2d(3x3, stride, pad=1, bias) + BatchNorm2d (eval) + optional GELU.

    x: (N, Cin, H, W) float32, NCHW (PyTorch layout).  Returns (N, Cout, Ho, Wo).
    """
    N, C, H, W = x.shape
    weight = p["weight"]                        # (Cout, Cin, 3, 3)
    Cout = weight.shape[0]

    # Fold conv bias + BatchNorm (running stats) into the GEMM weight & bias.
    scale = p["gamma"] * lax.rsqrt(p["var"] + p["eps"])        # (Cout,)
    w2d = weight.reshape(Cout, C * 9) * scale[:, None]          # (Cout, 9*Cin)
    b = ((p["bias"] - p["mean"]) * scale + p["beta"])
    b = b.reshape(Cout, 1).astype(jnp.float32)

    pat, Ho, Wo = _im2col_3x3_nchw(x, stride)                   # (N, 9C, P)
    K = C * 9
    P = Ho * Wo
    TP, P_pad = _choose_p_tile(P)
    if P_pad != P:
        pat = jnp.pad(pat, ((0, 0), (0, 0), (0, P_pad - P)))

    if compute_dtype is not None:
        pat = pat.astype(compute_dtype)
        w2d = w2d.astype(compute_dtype)
    else:
        w2d = w2d.astype(jnp.float32)

    out = pl.pallas_call(
        functools.partial(_conv_gemm_bn_act_kernel, apply_gelu=apply_gelu),
        out_shape=jax.ShapeDtypeStruct((N, Cout, P_pad), jnp.float32),
        grid_spec=pltpu.PrefetchScalarGridSpec(
            num_scalar_prefetch=0,
            grid=(N, P_pad // TP),
            in_specs=[
                pl.BlockSpec((1, K, TP), lambda n, g: (n, 0, g)),
                pl.BlockSpec((Cout, K), lambda n, g: (0, 0)),
                pl.BlockSpec((Cout, 1), lambda n, g: (0, 0)),
            ],
            out_specs=pl.BlockSpec((1, Cout, TP), lambda n, g: (n, 0, g)),
        ),
        compiler_params=pltpu.CompilerParams(
            dimension_semantics=("parallel", "parallel"),
            vmem_limit_bytes=32 * 1024 * 1024,
        ),
    )(pat, w2d, b)

    if P_pad != P:
        out = out[:, :, :P]
    return out.reshape(N, Cout, Ho, Wo)


# -----------------------------------------------------------------------------
# PatchEmbed.forward
# -----------------------------------------------------------------------------
def patch_embed_forward(x_nchw, params, compute_dtype=COMPUTE_DTYPE):
    """PatchEmbed.forward: 4x (Conv3x3 + BN [+ GELU]); strides 2,1,2,1."""
    strides = (2, 1, 2, 1)
    y = x_nchw
    for i, layer in enumerate(params):
        y = conv3x3_bn_act(
            y, layer,
            stride=strides[i],
            apply_gelu=(i < 3),                 # last layer: Conv + BN only
            compute_dtype=compute_dtype,
        )
    return y


# -----------------------------------------------------------------------------
# Parameters + pure-JAX reference
# -----------------------------------------------------------------------------
def init_params(key, in_chans, embed_dim):
    chans = [
        (in_chans, embed_dim // 2),
        (embed_dim // 2, embed_dim // 2),
        (embed_dim // 2, embed_dim),
        (embed_dim, embed_dim),
    ]
    params = []
    for cin, cout in chans:
        key, k1, k2, k3, k4, k5, k6 = jax.random.split(key, 7)
        params.append(dict(
            weight=0.1 * jax.random.normal(k1, (cout, cin, 3, 3), jnp.float32),
            bias=0.05 * jax.random.normal(k2, (cout,), jnp.float32),
            gamma=1.0 + 0.1 * jax.random.normal(k3, (cout,), jnp.float32),
            beta=0.05 * jax.random.normal(k4, (cout,), jnp.float32),
            mean=0.05 * jax.random.normal(k5, (cout,), jnp.float32),
            var=jnp.abs(1.0 + 0.1 * jax.random.normal(k6, (cout,), jnp.float32)),
            eps=1e-5,
        ))
    return params


def _ref_forward(x, params):
    strides = (2, 1, 2, 1)
    y = x
    for i, p in enumerate(params):
        s = strides[i]
        y = lax.conv_general_dilated(
            y, p["weight"], (s, s), ((1, 1), (1, 1)),
            dimension_numbers=("NCHW", "OIHW", "NCHW"))
        y = y + p["bias"][None, :, None, None]
        scale = p["gamma"] * lax.rsqrt(p["var"] + p["eps"])
        y = ((y - p["mean"][None, :, None, None]) * scale[None, :, None, None]
             + p["beta"][None, :, None, None])
        if i < 3:
            y = _gelu_tanh(y)
    return y


if __name__ == "__main__":
    # Small shapes consistent with the module: NCHW input, embed_dim even.
    N, in_chans, H, W = 2, 3, 16, 16
    embed_dim = 32

    key = jax.random.PRNGKey(0)
    kx, kp = jax.random.split(key)
    x = jax.random.normal(kx, (N, in_chans, H, W), dtype=jnp.float32)
    params = init_params(kp, in_chans, embed_dim)

    fwd = jax.jit(patch_embed_forward)
    out = fwd(x, params)
    out = jax.block_until_ready(out)
    assert out.shape == (N, embed_dim, H // 4, W // 4), out.shape

    ref = _ref_forward(x, params)
    err = float(jnp.max(jnp.abs(out - ref)))
    assert jnp.allclose(out, ref, atol=1e-3, rtol=1e-3), err

    print("KERNEL_OK")
</pallas_src>

<mosaic_0001>
module attributes {stable_mosaic.version = 11 : i64} {
  func.func @_conv_gemm_bn_act_kernel(%arg0: i32, %arg1: i32, %arg2: memref<1x27x64xf32, #tpu.memory_space<vmem>>, %arg3: memref<16x27xf32, #tpu.memory_space<vmem>>, %arg4: memref<16x1xf32, #tpu.memory_space<vmem>>, %arg5: memref<1x16x64xf32, #tpu.memory_space<vmem>>) attributes {dimension_semantics = [#tpu.dimension_semantics<parallel>, #tpu.dimension_semantics<parallel>], iteration_bounds = array<i64: 2, 1>, scalar_prefetch = 0 : i64, scratch_operands = 0 : i64, tpu.core_type = #tpu.core_type<tc>, window_params = [{transform_indices = @transform_0, window_bounds = array<i64: 1, 27, 64>}, {pipeline_mode = #tpu.pipeline_mode<synchronous>, transform_indices = @transform_1, window_bounds = array<i64: 16, 27>}, {pipeline_mode = #tpu.pipeline_mode<synchronous>, transform_indices = @transform_2, window_bounds = array<i64: 16, 1>}, {transform_indices = @transform_3, window_bounds = array<i64: 1, 16, 64>}]} {
    %c0 = arith.constant 0 : index
    %c0_0 = arith.constant 0 : index
    %0 = vector.load %arg3[%c0, %c0_0] : memref<16x27xf32, #tpu.memory_space<vmem>>, vector<16x27xf32>
    %c0_1 = arith.constant 0 : index
    %c0_2 = arith.constant 0 : index
    %c0_3 = arith.constant 0 : index
    %1 = vector.load %arg2[%c0_1, %c0_2, %c0_3] : memref<1x27x64xf32, #tpu.memory_space<vmem>>, vector<1x27x64xf32>
    %2 = vector.shape_cast %1 : vector<1x27x64xf32> to vector<27x64xf32>
    %cst = arith.constant dense<0.000000e+00> : vector<16x64xf32>
    %3 = tpu.matmul %0, %2, %cst {dimension_numbers = #tpu.dot_dimension_numbers<[1], [0], [0], [1], [0, 0, 1, 1], [], []>} : vector<16x27xf32>, vector<27x64xf32>, vector<16x64xf32> -> vector<16x64xf32>
    %c0_4 = arith.constant 0 : index
    %c0_5 = arith.constant 0 : index
    %4 = vector.load %arg4[%c0_4, %c0_5] : memref<16x1xf32, #tpu.memory_space<vmem>>, vector<16x1xf32>
    %5 = vector.broadcast %4 : vector<16x1xf32> to vector<16x64xf32>
    %6 = arith.addf %3, %5 : vector<16x64xf32>
    %cst_6 = arith.constant 5.000000e-01 : f32
    %7 = vector.broadcast %cst_6 : f32 to vector<16x64xf32>
    %8 = arith.mulf %7, %6 : vector<16x64xf32>
    %9 = arith.mulf %6, %6 : vector<16x64xf32>
    %10 = arith.mulf %9, %6 : vector<16x64xf32>
    %cst_7 = arith.constant 4.471500e-02 : f32
    %11 = vector.broadcast %cst_7 : f32 to vector<16x64xf32>
    %12 = arith.mulf %11, %10 : vector<16x64xf32>
    %13 = arith.addf %6, %12 : vector<16x64xf32>
    %cst_8 = arith.constant 0.797884583 : f32
    %14 = vector.broadcast %cst_8 : f32 to vector<16x64xf32>
    %15 = arith.mulf %14, %13 : vector<16x64xf32>
    %16 = math.tanh %15 : vector<16x64xf32>
    %cst_9 = arith.constant 1.000000e+00 : f32
    %17 = vector.broadcast %cst_9 : f32 to vector<16x64xf32>
    %18 = arith.addf %17, %16 : vector<16x64xf32>
    %19 = arith.mulf %8, %18 : vector<16x64xf32>
    %c0_10 = arith.constant 0 : index
    %c0_11 = arith.constant 0 : index
    %c0_12 = arith.constant 0 : index
    %20 = vector.load %arg5[%c0_10, %c0_11, %c0_12] : memref<1x16x64xf32, #tpu.memory_space<vmem>>, vector<1x16x64xf32>
    %21 = vector.shape_cast %20 : vector<1x16x64xf32> to vector<16x64xf32>
    %22 = vector.shape_cast %19 : vector<16x64xf32> to vector<1x16x64xf32>
    tpu.vector_store %arg5[%c0_10, %c0_11, %c0_12], %22 {strides = array<i32>} : memref<1x16x64xf32, #tpu.memory_space<vmem>>, vector<1x16x64xf32>,
    return
  }
  func.func @transform_0(%arg0: i32, %arg1: i32) -> (i32, i32, i32) {
    %c0_i32 = arith.constant 0 : i32
    %c0_i32_0 = arith.constant 0 : i32
    return %arg0, %c0_i32, %arg1 : i32, i32, i32
  }
  func.func @transform_1(%arg0: i32, %arg1: i32) -> (i32, i32) {
    %c0_i32 = arith.constant 0 : i32
    %c0_i32_0 = arith.constant 0 : i32
    %c0_i32_1 = arith.constant 0 : i32
    return %c0_i32, %c0_i32_0 : i32, i32
  }
  func.func @transform_2(%arg0: i32, %arg1: i32) -> (i32, i32) {
    %c0_i32 = arith.constant 0 : i32
    %c0_i32_0 = arith.constant 0 : i32
    %c0_i32_1 = arith.constant 0 : i32
    return %c0_i32, %c0_i32_0 : i32, i32
  }
  func.func @transform_3(%arg0: i32, %arg1: i32) -> (i32, i32, i32) {
    %c0_i32 = arith.constant 0 : i32
    %c0_i32_0 = arith.constant 0 : i32
    return %arg0, %c0_i32, %arg1 : i32, i32, i32
  }
}

module attributes {stable_mosaic.version = 11 : i64} {
  func.func @_conv_gemm_bn_act_kernel(%arg0: i32, %arg1: i32, %arg2: memref<1x144x64xf32, #tpu.memory_space<vmem>>, %arg3: memref<16x144xf32, #tpu.memory_space<vmem>>, %arg4: memref<16x1xf32, #tpu.memory_space<vmem>>, %arg5: memref<1x16x64xf32, #tpu.memory_space<vmem>>) attributes {dimension_semantics = [#tpu.dimension_semantics<parallel>, #tpu.dimension_semantics<parallel>], iteration_bounds = array<i64: 2, 1>, scalar_prefetch = 0 : i64, scratch_operands = 0 : i64, tpu.core_type = #tpu.core_type<tc>, window_params = [{transform_indices = @transform_0, window_bounds = array<i64: 1, 144, 64>}, {pipeline_mode = #tpu.pipeline_mode<synchronous>, transform_indices = @transform_1, window_bounds = array<i64: 16, 144>}, {pipeline_mode = #tpu.pipeline_mode<synchronous>, transform_indices = @transform_2, window_bounds = array<i64: 16, 1>}, {transform_indices = @transform_3, window_bounds = array<i64: 1, 16, 64>}]} {
    %c0 = arith.constant 0 : index
    %c0_0 = arith.constant 0 : index
    %0 = vector.load %arg3[%c0, %c0_0] : memref<16x144xf32, #tpu.memory_space<vmem>>, vector<16x144xf32>
    %c0_1 = arith.constant 0 : index
    %c0_2 = arith.constant 0 : index
    %c0_3 = arith.constant 0 : index
    %1 = vector.load %arg2[%c0_1, %c0_2, %c0_3] : memref<1x144x64xf32, #tpu.memory_space<vmem>>, vector<1x144x64xf32>
    %2 = vector.shape_cast %1 : vector<1x144x64xf32> to vector<144x64xf32>
    %cst = arith.constant dense<0.000000e+00> : vector<16x64xf32>
    %3 = tpu.matmul %0, %2, %cst {dimension_numbers = #tpu.dot_dimension_numbers<[1], [0], [0], [1], [0, 0, 1, 1], [], []>} : vector<16x144xf32>, vector<144x64xf32>, vector<16x64xf32> -> vector<16x64xf32>
    %c0_4 = arith.constant 0 : index
    %c0_5 = arith.constant 0 : index
    %4 = vector.load %arg4[%c0_4, %c0_5] : memref<16x1xf32, #tpu.memory_space<vmem>>, vector<16x1xf32>
    %5 = vector.broadcast %4 : vector<16x1xf32> to vector<16x64xf32>
    %6 = arith.addf %3, %5 : vector<16x64xf32>
    %cst_6 = arith.constant 5.000000e-01 : f32
    %7 = vector.broadcast %cst_6 : f32 to vector<16x64xf32>
    %8 = arith.mulf %7, %6 : vector<16x64xf32>
    %9 = arith.mulf %6, %6 : vector<16x64xf32>
    %10 = arith.mulf %9, %6 : vector<16x64xf32>
    %cst_7 = arith.constant 4.471500e-02 : f32
    %11 = vector.broadcast %cst_7 : f32 to vector<16x64xf32>
    %12 = arith.mulf %11, %10 : vector<16x64xf32>
    %13 = arith.addf %6, %12 : vector<16x64xf32>
    %cst_8 = arith.constant 0.797884583 : f32
    %14 = vector.broadcast %cst_8 : f32 to vector<16x64xf32>
    %15 = arith.mulf %14, %13 : vector<16x64xf32>
    %16 = math.tanh %15 : vector<16x64xf32>
    %cst_9 = arith.constant 1.000000e+00 : f32
    %17 = vector.broadcast %cst_9 : f32 to vector<16x64xf32>
    %18 = arith.addf %17, %16 : vector<16x64xf32>
    %19 = arith.mulf %8, %18 : vector<16x64xf32>
    %c0_10 = arith.constant 0 : index
    %c0_11 = arith.constant 0 : index
    %c0_12 = arith.constant 0 : index
    %20 = vector.load %arg5[%c0_10, %c0_11, %c0_12] : memref<1x16x64xf32, #tpu.memory_space<vmem>>, vector<1x16x64xf32>
    %21 = vector.shape_cast %20 : vector<1x16x64xf32> to vector<16x64xf32>
    %22 = vector.shape_cast %19 : vector<16x64xf32> to vector<1x16x64xf32>
    tpu.vector_store %arg5[%c0_10, %c0_11, %c0_12], %22 {strides = array<i32>} : memref<1x16x64xf32, #tpu.memory_space<vmem>>, vector<1x16x64xf32>,
    return
  }
  func.func @transform_0(%arg0: i32, %arg1: i32) -> (i32, i32, i32) {
    %c0_i32 = arith.constant 0 : i32
    %c0_i32_0 = arith.constant 0 : i32
    return %arg0, %c0_i32, %arg1 : i32, i32, i32
  }
  func.func @transform_1(%arg0: i32, %arg1: i32) -> (i32, i32) {
    %c0_i32 = arith.constant 0 : i32
    %c0_i32_0 = arith.constant 0 : i32
    %c0_i32_1 = arith.constant 0 : i32
    return %c0_i32, %c0_i32_0 : i32, i32
  }
  func.func @transform_2(%arg0: i32, %arg1: i32) -> (i32, i32) {
    %c0_i32 = arith.constant 0 : i32
    %c0_i32_0 = arith.constant 0 : i32
    %c0_i32_1 = arith.constant 0 : i32
    return %c0_i32, %c0_i32_0 : i32, i32
  }
  func.func @transform_3(%arg0: i32, %arg1: i32) -> (i32, i32, i32) {
    %c0_i32 = arith.constant 0 : i32
    %c0_i32_0 = arith.constant 0 : i32
    return %arg0, %c0_i32, %arg1 : i32, i32, i32
  }
}

module attributes {stable_mosaic.version = 11 : i64} {
  func.func @_conv_gemm_bn_act_kernel(%arg0: i32, %arg1: i32, %arg2: memref<1x144x16xf32, #tpu.memory_space<vmem>>, %arg3: memref<32x144xf32, #tpu.memory_space<vmem>>, %arg4: memref<32x1xf32, #tpu.memory_space<vmem>>, %arg5: memref<1x32x16xf32, #tpu.memory_space<vmem>>) attributes {dimension_semantics = [#tpu.dimension_semantics<parallel>, #tpu.dimension_semantics<parallel>], iteration_bounds = array<i64: 2, 1>, scalar_prefetch = 0 : i64, scratch_operands = 0 : i64, tpu.core_type = #tpu.core_type<tc>, window_params = [{transform_indices = @transform_0, window_bounds = array<i64: 1, 144, 16>}, {pipeline_mode = #tpu.pipeline_mode<synchronous>, transform_indices = @transform_1, window_bounds = array<i64: 32, 144>}, {pipeline_mode = #tpu.pipeline_mode<synchronous>, transform_indices = @transform_2, window_bounds = array<i64: 32, 1>}, {transform_indices = @transform_3, window_bounds = array<i64: 1, 32, 16>}]} {
    %c0 = arith.constant 0 : index
    %c0_0 = arith.constant 0 : index
    %0 = vector.load %arg3[%c0, %c0_0] : memref<32x144xf32, #tpu.memory_space<vmem>>, vector<32x144xf32>
    %c0_1 = arith.constant 0 : index
    %c0_2 = arith.constant 0 : index
    %c0_3 = arith.constant 0 : index
    %1 = vector.load %arg2[%c0_1, %c0_2, %c0_3] : memref<1x144x16xf32, #tpu.memory_space<vmem>>, vector<1x144x16xf32>
    %2 = vector.shape_cast %1 : vector<1x144x16xf32> to vector<144x16xf32>
    %cst = arith.constant dense<0.000000e+00> : vector<32x16xf32>
    %3 = tpu.matmul %0, %2, %cst {dimension_numbers = #tpu.dot_dimension_numbers<[1], [0], [0], [1], [0, 0, 1, 1], [], []>} : vector<32x144xf32>, vector<144x16xf32>, vector<32x16xf32> -> vector<32x16xf32>
    %c0_4 = arith.constant 0 : index
    %c0_5 = arith.constant 0 : index
    %4 = vector.load %arg4[%c0_4, %c0_5] : memref<32x1xf32, #tpu.memory_space<vmem>>, vector<32x1xf32>
    %5 = vector.broadcast %4 : vector<32x1xf32> to vector<32x16xf32>
    %6 = arith.addf %3, %5 : vector<32x16xf32>
    %cst_6 = arith.constant 5.000000e-01 : f32
    %7 = vector.broadcast %cst_6 : f32 to vector<32x16xf32>
    %8 = arith.mulf %7, %6 : vector<32x16xf32>
    %9 = arith.mulf %6, %6 : vector<32x16xf32>
    %10 = arith.mulf %9, %6 : vector<32x16xf32>
    %cst_7 = arith.constant 4.471500e-02 : f32
    %11 = vector.broadcast %cst_7 : f32 to vector<32x16xf32>
    %12 = arith.mulf %11, %10 : vector<32x16xf32>
    %13 = arith.addf %6, %12 : vector<32x16xf32>
    %cst_8 = arith.constant 0.797884583 : f32
    %14 = vector.broadcast %cst_8 : f32 to vector<32x16xf32>
    %15 = arith.mulf %14, %13 : vector<32x16xf32>
    %16 = math.tanh %15 : vector<32x16xf32>
    %cst_9 = arith.constant 1.000000e+00 : f32
    %17 = vector.broadcast %cst_9 : f32 to vector<32x16xf32>
    %18 = arith.addf %17, %16 : vector<32x16xf32>
    %19 = arith.mulf %8, %18 : vector<32x16xf32>
    %c0_10 = arith.constant 0 : index
    %c0_11 = arith.constant 0 : index
    %c0_12 = arith.constant 0 : index
    %20 = vector.load %arg5[%c0_10, %c0_11, %c0_12] : memref<1x32x16xf32, #tpu.memory_space<vmem>>, vector<1x32x16xf32>
    %21 = vector.shape_cast %20 : vector<1x32x16xf32> to vector<32x16xf32>
    %22 = vector.shape_cast %19 : vector<32x16xf32> to vector<1x32x16xf32>
    tpu.vector_store %arg5[%c0_10, %c0_11, %c0_12], %22 {strides = array<i32>} : memref<1x32x16xf32, #tpu.memory_space<vmem>>, vector<1x32x16xf32>,
    return
  }
  func.func @transform_0(%arg0: i32, %arg1: i32) -> (i32, i32, i32) {
    %c0_i32 = arith.constant 0 : i32
    %c0_i32_0 = arith.constant 0 : i32
    return %arg0, %c0_i32, %arg1 : i32, i32, i32
  }
  func.func @transform_1(%arg0: i32, %arg1: i32) -> (i32, i32) {
    %c0_i32 = arith.constant 0 : i32
    %c0_i32_0 = arith.constant 0 : i32
    %c0_i32_1 = arith.constant 0 : i32
    return %c0_i32, %c0_i32_0 : i32, i32
  }
  func.func @transform_2(%arg0: i32, %arg1: i32) -> (i32, i32) {
    %c0_i32 = arith.constant 0 : i32
    %c0_i32_0 = arith.constant 0 : i32
    %c0_i32_1 = arith.constant 0 : i32
    return %c0_i32, %c0_i32_0 : i32, i32
  }
  func.func @transform_3(%arg0: i32, %arg1: i32) -> (i32, i32, i32) {
    %c0_i32 = arith.constant 0 : i32
    %c0_i32_0 = arith.constant 0 : i32
    return %arg0, %c0_i32, %arg1 : i32, i32, i32
  }
}

module attributes {stable_mosaic.version = 11 : i64} {
  func.func @_conv_gemm_bn_act_kernel(%arg0: i32, %arg1: i32, %arg2: memref<1x288x16xf32, #tpu.memory_space<vmem>>, %arg3: memref<32x288xf32, #tpu.memory_space<vmem>>, %arg4: memref<32x1xf32, #tpu.memory_space<vmem>>, %arg5: memref<1x32x16xf32, #tpu.memory_space<vmem>>) attributes {dimension_semantics = [#tpu.dimension_semantics<parallel>, #tpu.dimension_semantics<parallel>], iteration_bounds = array<i64: 2, 1>, scalar_prefetch = 0 : i64, scratch_operands = 0 : i64, tpu.core_type = #tpu.core_type<tc>, window_params = [{transform_indices = @transform_0, window_bounds = array<i64: 1, 288, 16>}, {pipeline_mode = #tpu.pipeline_mode<synchronous>, transform_indices = @transform_1, window_bounds = array<i64: 32, 288>}, {pipeline_mode = #tpu.pipeline_mode<synchronous>, transform_indices = @transform_2, window_bounds = array<i64: 32, 1>}, {transform_indices = @transform_3, window_bounds = array<i64: 1, 32, 16>}]} {
    %c0 = arith.constant 0 : index
    %c0_0 = arith.constant 0 : index
    %0 = vector.load %arg3[%c0, %c0_0] : memref<32x288xf32, #tpu.memory_space<vmem>>, vector<32x288xf32>
    %c0_1 = arith.constant 0 : index
    %c0_2 = arith.constant 0 : index
    %c0_3 = arith.constant 0 : index
    %1 = vector.load %arg2[%c0_1, %c0_2, %c0_3] : memref<1x288x16xf32, #tpu.memory_space<vmem>>, vector<1x288x16xf32>
    %2 = vector.shape_cast %1 : vector<1x288x16xf32> to vector<288x16xf32>
    %cst = arith.constant dense<0.000000e+00> : vector<32x16xf32>
    %3 = tpu.matmul %0, %2, %cst {dimension_numbers = #tpu.dot_dimension_numbers<[1], [0], [0], [1], [0, 0, 1, 1], [], []>} : vector<32x288xf32>, vector<288x16xf32>, vector<32x16xf32> -> vector<32x16xf32>
    %c0_4 = arith.constant 0 : index
    %c0_5 = arith.constant 0 : index
    %4 = vector.load %arg4[%c0_4, %c0_5] : memref<32x1xf32, #tpu.memory_space<vmem>>, vector<32x1xf32>
    %5 = vector.broadcast %4 : vector<32x1xf32> to vector<32x16xf32>
    %6 = arith.addf %3, %5 : vector<32x16xf32>
    %c0_6 = arith.constant 0 : index
    %c0_7 = arith.constant 0 : index
    %c0_8 = arith.constant 0 : index
    %7 = vector.load %arg5[%c0_6, %c0_7, %c0_8] : memref<1x32x16xf32, #tpu.memory_space<vmem>>, vector<1x32x16xf32>
    %8 = vector.shape_cast %7 : vector<1x32x16xf32> to vector<32x16xf32>
    %9 = vector.shape_cast %6 : vector<32x16xf32> to vector<1x32x16xf32>
    tpu.vector_store %arg5[%c0_6, %c0_7, %c0_8], %9 {strides = array<i32>} : memref<1x32x16xf32, #tpu.memory_space<vmem>>, vector<1x32x16xf32>,
    return
  }
  func.func @transform_0(%arg0: i32, %arg1: i32) -> (i32, i32, i32) {
    %c0_i32 = arith.constant 0 : i32
    %c0_i32_0 = arith.constant 0 : i32
    return %arg0, %c0_i32, %arg1 : i32, i32, i32
  }
  func.func @transform_1(%arg0: i32, %arg1: i32) -> (i32, i32) {
    %c0_i32 = arith.constant 0 : i32
    %c0_i32_0 = arith.constant 0 : i32
    %c0_i32_1 = arith.constant 0 : i32
    return %c0_i32, %c0_i32_0 : i32, i32
  }
  func.func @transform_2(%arg0: i32, %arg1: i32) -> (i32, i32) {
    %c0_i32 = arith.constant 0 : i32
    %c0_i32_0 = arith.constant 0 : i32
    %c0_i32_1 = arith.constant 0 : i32
    return %c0_i32, %c0_i32_0 : i32, i32
  }
  func.func @transform_3(%arg0: i32, %arg1: i32) -> (i32, i32, i32) {
    %c0_i32 = arith.constant 0 : i32
    %c0_i32_0 = arith.constant 0 : i32
    return %arg0, %c0_i32, %arg1 : i32, i32, i32
  }
}

</mosaic_0001>

<bundles_post_ra>
// kernel: patch_embed_forward.4
= control target key start
LH: loop header
LB: loop body
LE: loop exit
PB: predicated region body
PF: predicated region fallthrough
CT: control target
= control target key end

     0   :  { %s518_s12 = smov 0   ;;  %s520_s13 = smov 0   ;;  %s569_s0 = inlined_call_operand.vmem [shape: f32[2,27,64], index: 0, kind: input, shape index: {}]   ;;  %s570_s1 = inlined_call_operand.vmem [shape: f32[16,27], index: 1, kind: input, shape index: {}]   ;;  %s571_s2 = inlined_call_operand.vmem [shape: f32[16,1], index: 2, kind: input, shape index: {}]   ;;  %s572_s3 = inlined_call_operand.vmem [shape: f32[2,16,64], index: 3, kind: output, shape index: {}]  }
   0x1   :  { %s522_s14 = smov 0  }
   0x2 LB: > { %s25_s15 = sadd.s32 1, %s491_s13  ;;  %p414_p0 = scmp.ge.s32.totalorder %s495_s14, 1  ;;  %s495_s14 = sphi %s522_s14, %s13_s14   ;;  %s491_s13 = sphi %s520_s13, %s574_s13   ;;  %s487_s12 = sphi %s518_s12, %s573_s12  }
   0x3   : > { %p27_p1 = scmp.ge.s32.totalorder %s25_s15, 2  ;;  %p156_p2 = scmp.lt.s32.totalorder %s495_s14, 3 }
   0x5   : > { %s576_s15 = smov (%p27_p1, %s25_s15), 0  ;;  %p157_p3 = pnand %p414_p0, %p156_p2 }
   0x6   : > { %p186_p4 = scmp.lt.s32.totalorder (!%p157_p3), %s487_s12, 1 }
   0x7   : > { %160 = sbr.rel (%p157_p3) target bundleno = 250 (0xfa), region = 32 }
   0xc   : > { %v202_v0 = vld [vmem:[%s570_s1] sm:$0xff]  ;;  %vm220_vm0 = vcmask 220160   ;;  %v497_v1 = vmov 0   ;;  %s578_s12 = smov (!%p186_p4, %s487_s12), 1  ;;  %v209_v3 = vld [vmem:[%s571_s2 + $0x8] sm:$0xff]  ;;  %vm227_vm1 = vcmask 1042432  }
   0xd   : > { %440 = vmatprep.mubr.msk.f32.mxu0 %vm220_vm0, %v202_v0  ;;  %468 = vset.pattern.permute.xlu0 %v497_v1  ;;  %v208_v2 = vld [vmem:[%s571_s2] sm:$0xff]  ;;  %s424_s22 = sshll.u32 %s578_s12, 5  ;;  %v203_v8 = vld [vmem:[%s570_s1 + $0x8] sm:$0xff]  ;;  %s425_s28 = sshll.u32 %s578_s12, 4  ;;  %vm324_vm2 = vcmask 523264  }
   0xe   : > { %212 = vperm.xlu0 %468, %v208_v2   ;;  %s193_s25 = scalar_lea.vmem %s569_s0, %s424_s22  ;;  %s201_s4 = scalar_lea.vmem %s572_s3, %s425_s28 }
   0xf   : > { %v207_v4 = vld [vmem:[%s193_s25 + $0x18] sm:$0x7]  ;;  %v206_v5 = vld [vmem:[%s193_s25 + $0x10] sm:$0xff]  ;;  %v205_v6 = vld [vmem:[%s193_s25 + $0x8] sm:$0xff] }
  0x10   : > { %432 = vmatprep.subr.msk.mxu0 %vm227_vm1, %v207_v4  ;;  %v204_v7 = vld [vmem:[%s193_s25] sm:$0xff] }
  0x11   : > { %433 = vmatpush3.msk.msra.mxu0 %vm227_vm1, %v207_v4 }
  0x12   : > { %217 = vperm.xlu0 %468, %v209_v3   ;;  %434 = vmatprep.subr.mxu0 %v206_v5 }
  0x13   : > { %435 = vmatpush3.msra.mxu0 %v206_v5 }
  0x14   : > { %436 = vmatprep.subr.mxu0 %v205_v6 }
  0x15   : > { %437 = vmatpush3.msra.mxu0 %v205_v6 }
  0x16   : > { %438 = vmatprep.subr.mxu0 %v204_v7 }
  0x17   : > { %439 = vmatpush3.msra.mxu0 %v204_v7 }
  0x18   : > { %441 = vmatmul.mubr.msk.f32.vlgmr.msra.gmra.mxu0 %vm220_vm0, %v203_v8 }
  0x89   : > { %v213_v9 = vpop.permute.xlu0 %212 }
  0x8d   : > { %v218_v10 = vpop.permute.xlu0 %217 }
  0xd8   : > { %v442_v11 = vpop.f32.mrf.mxu0 }
  0xd9   : > { %v303_v12 = vadd.f32 %v442_v11, %v218_v10 }
  0xda   : > { %v297_v13 = vpop.f32.mrf.mxu0 }
  0xdb   : > { %v309_v14 = vmul.f32 %v303_v12, %v303_v12  ;;  %v298_v15 = vadd.f32 %v297_v13, %v213_v9  ;;  %v307_v26 = vmul.f32 0.5, %v303_v12 }
  0xdd   : > { %v311_v16 = vmul.f32 %v309_v14, %v303_v12  ;;  %v308_v17 = vmul.f32 %v298_v15, %v298_v15  ;;  %v306_v30 = vmul.f32 0.5, %v298_v15 }
  0xdf   : > { %v313_v18 = vmul.f32 0.044715, %v311_v16  ;;  %v310_v19 = vmul.f32 %v308_v17, %v298_v15 }
  0xe1   : > { %v315_v20 = vadd.f32 %v313_v18, %v303_v12  ;;  %v312_v21 = vmul.f32 0.044715, %v310_v19 }
  0xe3   : > { %v317_v22 = vmul.f32 0.7978846, %v315_v20  ;;  %v314_v23 = vadd.f32 %v312_v21, %v298_v15 }
  0xe5   : > { %469 = vtanh.f32 %v317_v22  ;;  %v316_v24 = vmul.f32 0.7978846, %v314_v23 }
  0xe7   : > { %471 = vtanh.f32 %v316_v24 }
  0xf2   : > { %v470_v25 = vpop.eup %469 }
  0xf3   : > { %v321_v27 = vadd.f32 1.0, %v470_v25 }
  0xf4   : > { %v472_v28 = vpop.eup %471 }
  0xf5   : > { %v323_v29 = vmul.f32 %v321_v27, %v307_v26  ;;  %v320_v31 = vadd.f32 1.0, %v472_v28 }
  0xf7   : > { %326 = vst.msk [vmem:[%s201_s4 + $0x8] sm:$0xff] %vm324_vm2, %v323_v29  ;;  %v322_v32 = vmul.f32 %v320_v31, %v306_v30 }
  0xf9   : > { %325 = vst.msk [vmem:[%s201_s4] sm:$0xff] %vm324_vm2, %v322_v32 }
  0xfa PF: > { %s13_s14 = sadd.s32 1, %s495_s14   ;;  %s573_s12 = smov %s491_s13 }
  0xfb   : > { %p10_p5 = scmp.ge.s32.totalorder %s13_s14, 4   ;;  %s574_s13 = smov %s576_s15 }
  0xfd   :  { %12 = sbr.rel (!%p10_p5) target bundleno = 2 (0x2), region = 62 }

// kernel: patch_embed_forward.5
= control target key start
LH: loop header
LB: loop body
LE: loop exit
PB: predicated region body
PF: predicated region fallthrough
CT: control target
= control target key end

     0   :  { %s549_s12 = smov 0   ;;  %s551_s13 = smov 0   ;;  %s660_s0 = inlined_call_operand.vmem [shape: f32[2,144,64], index: 0, kind: input, shape index: {}]   ;;  %s661_s1 = inlined_call_operand.vmem [shape: f32[16,144], index: 1, kind: input, shape index: {}]   ;;  %s662_s2 = inlined_call_operand.vmem [shape: f32[16,1], index: 2, kind: input, shape index: {}]   ;;  %s663_s3 = inlined_call_operand.vmem [shape: f32[2,16,64], index: 3, kind: output, shape index: {}]  }
   0x1   :  { %s553_s14 = smov 0  }
   0x2 LB: > { %s25_s15 = sadd.s32 1, %s521_s13  ;;  %p426_p0 = scmp.ge.s32.totalorder %s525_s14, 1  ;;  %s525_s14 = sphi %s553_s14, %s13_s14   ;;  %s521_s13 = sphi %s551_s13, %s665_s13   ;;  %s517_s12 = sphi %s549_s12, %s664_s12  }
   0x3   : > { %p27_p1 = scmp.ge.s32.totalorder %s25_s15, 2  ;;  %p156_p2 = scmp.lt.s32.totalorder %s525_s14, 3 }
   0x5   : > { %s667_s15 = smov (%p27_p1, %s25_s15), 0  ;;  %p157_p3 = pnand %p426_p0, %p156_p2 }
   0x6   : > { %p186_p4 = scmp.lt.s32.totalorder (!%p157_p3), %s517_s12, 1 }
   0x7   : > { %160 = sbr.rel (%p157_p3) target bundleno = 277 (0x115), region = 32 }
   0xc   : > { %v203_v0 = vld [vmem:[%s661_s1 + $0x8] sm:$0xff]  ;;  %vm236_vm0 = vcmask 130048   ;;  %v205_v1 = vld [vmem:[%s661_s1 + $0x18] sm:$0xff]  ;;  %v527_v2 = vmov 0.0   ;;  %v224_v3 = vld [vmem:[%s662_s2] sm:$0xff]  ;;  %s669_s12 = smov (!%p186_p4, %s517_s12), 1 }
   0xd   : > { %243 = vmatprep.subr.mxu0 %v527_v2  ;;  %435 = vmatprep.subr.mxu1 %v527_v2  ;;  %v528_v4 = vmov 0   ;;  %s471_s22 = smul.u32 144, %s669_s12  ;;  %v202_v23 = vld [vmem:[%s661_s1] sm:$0xff]  ;;  %v204_v24 = vld [vmem:[%s661_s1 + $0x10] sm:$0xff]  ;;  %v225_v25 = vld [vmem:[%s662_s2 + $0x8] sm:$0xff]  ;;  %s434_s5 = sshll.u32 %s669_s12, 4 }
   0xe   : > { %430 = vmatprep.mubr.msk.f32.mxu0 %vm236_vm0, %v203_v0  ;;  %431 = vmatprep.mubr.msk.f32.mxu1 %vm236_vm0, %v205_v1  ;;  %s201_s8 = scalar_lea.vmem %s663_s3, %s434_s5  ;;  %vm336_vm1 = vcmask 523264  }
   0xf   : > { %498 = vset.pattern.permute.xlu0 %v528_v4  ;;  %s584_s25 = scalar_lea.vmem %s660_s0, %s471_s22 }
  0x10   : > { %228 = vperm.xlu0 %498, %v224_v3   ;;  %v221_v5 = vld [vmem:[%s584_s25 + $0x78] sm:$0xff]  ;;  %v220_v6 = vld [vmem:[%s584_s25 + $0x70] sm:$0xff]  ;;  %v219_v7 = vld [vmem:[%s584_s25 + $0x68] sm:$0xff] }
  0x11   : > { %244 = vmatpush1.msra.mxu0 %v221_v5  ;;  %453 = vmatpush1.msra.mxu1 %v221_v5  ;;  %v218_v8 = vld [vmem:[%s584_s25 + $0x60] sm:$0xff]  ;;  %v217_v9 = vld [vmem:[%s584_s25 + $0x58] sm:$0xff]  ;;  %v216_v10 = vld [vmem:[%s584_s25 + $0x50] sm:$0xff] }
  0x12   : > { %245 = vmatprep.subr.mxu0 %v527_v2  ;;  %436 = vmatprep.subr.mxu1 %v527_v2  ;;  %v215_v11 = vld [vmem:[%s584_s25 + $0x48] sm:$0xff]  ;;  %v214_v12 = vld [vmem:[%s584_s25 + $0x40] sm:$0xff]  ;;  %v213_v13 = vld [vmem:[%s584_s25 + $0x38] sm:$0xff] }
  0x13   : > { %246 = vmatpush1.msra.mxu0 %v220_v6  ;;  %454 = vmatpush1.msra.mxu1 %v220_v6  ;;  %v212_v14 = vld [vmem:[%s584_s25 + $0x30] sm:$0xff]  ;;  %v211_v15 = vld [vmem:[%s584_s25 + $0x28] sm:$0xff]  ;;  %v210_v16 = vld [vmem:[%s584_s25 + $0x20] sm:$0xff] }
  0x14   : > { %247 = vmatprep.subr.mxu0 %v527_v2  ;;  %437 = vmatprep.subr.mxu1 %v527_v2  ;;  %v209_v17 = vld [vmem:[%s584_s25 + $0x18] sm:$0xff]  ;;  %v208_v18 = vld [vmem:[%s584_s25 + $0x10] sm:$0xff]  ;;  %v207_v19 = vld [vmem:[%s584_s25 + $0x8] sm:$0xff] }
  0x15   : > { %248 = vmatpush1.msra.mxu0 %v219_v7  ;;  %455 = vmatpush1.msra.mxu1 %v219_v7  ;;  %v206_v20 = vld [vmem:[%s584_s25] sm:$0xff]  ;;  %v223_v21 = vld [vmem:[%s584_s25 + $0x88] sm:$0xff] }
  0x16   : > { %249 = vmatprep.subr.mxu0 %v527_v2  ;;  %438 = vmatprep.subr.mxu1 %v527_v2  ;;  %v222_v22 = vld [vmem:[%s584_s25 + $0x80] sm:$0xff] }
  0x17   : > { %250 = vmatpush1.msra.mxu0 %v218_v8  ;;  %456 = vmatpush1.msra.mxu1 %v218_v8 }
  0x18   : > { %251 = vmatprep.subr.mxu0 %v527_v2  ;;  %439 = vmatprep.subr.mxu1 %v527_v2 }
  0x19   : > { %252 = vmatpush1.msra.mxu0 %v217_v9  ;;  %457 = vmatpush1.msra.mxu1 %v217_v9 }
  0x1a   : > { %253 = vmatprep.subr.mxu0 %v527_v2  ;;  %440 = vmatprep.subr.mxu1 %v527_v2 }
  0x1b   : > { %254 = vmatpush1.msra.mxu0 %v216_v10  ;;  %458 = vmatpush1.msra.mxu1 %v216_v10 }
  0x1c   : > { %255 = vmatprep.subr.mxu0 %v527_v2  ;;  %441 = vmatprep.subr.mxu1 %v527_v2 }
  0x1d   : > { %256 = vmatpush1.msra.mxu0 %v215_v11  ;;  %459 = vmatpush1.msra.mxu1 %v215_v11 }
  0x1e   : > { %257 = vmatprep.subr.mxu0 %v527_v2  ;;  %442 = vmatprep.subr.mxu1 %v527_v2 }
  0x1f   : > { %258 = vmatpush1.msra.mxu0 %v214_v12  ;;  %460 = vmatpush1.msra.mxu1 %v214_v12 }
  0x20   : > { %259 = vmatprep.subr.mxu0 %v527_v2  ;;  %443 = vmatprep.subr.mxu1 %v527_v2 }
  0x21   : > { %260 = vmatpush1.msra.mxu0 %v213_v13  ;;  %461 = vmatpush1.msra.mxu1 %v213_v13 }
  0x22   : > { %261 = vmatprep.subr.mxu0 %v527_v2  ;;  %444 = vmatprep.subr.mxu1 %v527_v2 }
  0x23   : > { %262 = vmatpush1.msra.mxu0 %v212_v14  ;;  %462 = vmatpush1.msra.mxu1 %v212_v14 }
  0x24   : > { %263 = vmatprep.subr.mxu0 %v527_v2  ;;  %445 = vmatprep.subr.mxu1 %v527_v2 }
  0x25   : > { %264 = vmatpush1.msra.mxu0 %v211_v15  ;;  %463 = vmatpush1.msra.mxu1 %v211_v15 }
  0x26   : > { %265 = vmatprep.subr.mxu0 %v527_v2  ;;  %446 = vmatprep.subr.mxu1 %v527_v2 }
  0x27   : > { %266 = vmatpush1.msra.mxu0 %v210_v16  ;;  %464 = vmatpush1.msra.mxu1 %v210_v16 }
  0x28   : > { %267 = vmatprep.subr.mxu0 %v527_v2  ;;  %447 = vmatprep.subr.mxu1 %v527_v2 }
  0x29   : > { %268 = vmatpush1.msra.mxu0 %v209_v17  ;;  %465 = vmatpush1.msra.mxu1 %v209_v17 }
  0x2a   : > { %269 = vmatprep.subr.mxu0 %v527_v2  ;;  %448 = vmatprep.subr.mxu1 %v527_v2 }
  0x2b   : > { %270 = vmatpush1.msra.mxu0 %v208_v18  ;;  %466 = vmatpush1.msra.mxu1 %v208_v18 }
  0x2c   : > { %271 = vmatprep.subr.mxu0 %v527_v2  ;;  %449 = vmatprep.subr.mxu1 %v527_v2 }
  0x2d   : > { %272 = vmatpush1.msra.mxu0 %v207_v19  ;;  %467 = vmatpush1.msra.mxu1 %v207_v19 }
  0x2e   : > { %273 = vmatprep.subr.mxu0 %v527_v2  ;;  %450 = vmatprep.subr.mxu1 %v527_v2 }
  0x2f   : > { %274 = vmatpush1.msra.mxu0 %v206_v20  ;;  %468 = vmatpush1.msra.mxu1 %v206_v20 }
  0x30   : > { %303 = vmatprep.subr.mxu0 %v527_v2  ;;  %451 = vmatprep.subr.mxu1 %v527_v2 }
  0x31   : > { %304 = vmatpush2.msra.mxu0 %v223_v21  ;;  %469 = vmatpush2.msra.mxu1 %v223_v21 }
  0x32   : > { %305 = vmatprep.subr.mxu0 %v527_v2  ;;  %452 = vmatprep.subr.mxu1 %v527_v2 }
  0x33   : > { %306 = vmatpush2.msra.mxu0 %v222_v22  ;;  %470 = vmatpush2.msra.mxu1 %v222_v22 }
  0x34   : > { %308 = vmatmul.mubr.f32.vlgmr.msra.gmra.mxu0 %v202_v23  ;;  %313 = vmatmul.mubr.f32.vlgmr.msra.gmra.mxu1 %v204_v24 }
  0x35   : > { %233 = vperm.xlu0 %498, %v225_v25  }
  0x8b   : > { %v229_v26 = vpop.permute.xlu0 %228 }
  0xb0   : > { %v234_v27 = vpop.permute.xlu0 %233 }
  0xf4   : > { %v309_v28 = vpop.f32.mrf.mxu0  ;;  %v314_v29 = vpop.f32.mrf.mxu1 }
  0xf5   : > { %v310_v30 = vadd.f32 %v309_v28, %v229_v26  ;;  %v315_v31 = vadd.f32 %v314_v29, %v234_v27 }
  0xf6   : > { %v311_v32 = vpop.f32.mrf.mxu0  ;;  %v316_v33 = vpop.f32.mrf.mxu1 }
  0xf7   : > { %v320_v34 = vmul.f32 %v310_v30, %v310_v30  ;;  %v321_v35 = vmul.f32 %v315_v31, %v315_v31  ;;  %v318_v46 = vmul.f32 0.5, %v310_v30  ;;  %v319_v48 = vmul.f32 0.5, %v315_v31 }
  0xf9   : > { %v322_v36 = vmul.f32 %v320_v34, %v310_v30  ;;  %v323_v37 = vmul.f32 %v321_v35, %v315_v31 }
  0xfb   : > { %v324_v38 = vmul.f32 0.044715, %v322_v36  ;;  %v325_v39 = vmul.f32 0.044715, %v323_v37 }
  0xfd   : > { %v326_v40 = vadd.f32 %v324_v38, %v310_v30  ;;  %v327_v41 = vadd.f32 %v325_v39, %v315_v31 }
  0xff   : > { %v328_v42 = vmul.f32 0.7978846, %v326_v40  ;;  %v329_v43 = vmul.f32 0.7978846, %v327_v41 }
 0x101   : > { %499 = vtanh.f32 %v328_v42 }
 0x102   : > { %501 = vtanh.f32 %v329_v43 }
 0x10e   : > { %v500_v44 = vpop.eup %499 }
 0x10f   : > { %v502_v45 = vpop.eup %501  ;;  %v332_v47 = vadd.f32 1.0, %v500_v44 }
 0x110   : > { %v333_v49 = vadd.f32 1.0, %v502_v45 }
 0x111   : > { %v334_v50 = vmul.f32 %v332_v47, %v318_v46 }
 0x112   : > { %v335_v51 = vmul.f32 %v333_v49, %v319_v48 }
 0x113   : > { %337 = vst.msk [vmem:[%s201_s8] sm:$0xff] %vm336_vm1, %v334_v50 }
 0x114   : > { %338 = vst.msk [vmem:[%s201_s8 + $0x8] sm:$0xff] %vm336_vm1, %v335_v51 }
 0x115 PF: > { %s13_s14 = sadd.s32 1, %s525_s14   ;;  %s664_s12 = smov %s521_s13 }
 0x116   : > { %p10_p5 = scmp.ge.s32.totalorder %s13_s14, 4   ;;  %s665_s13 = smov %s667_s15 }
 0x118   :  { %12 = sbr.rel (!%p10_p5) target bundleno = 2 (0x2), region = 62 }

// kernel: patch_embed_forward.6
= control target key start
LH: loop header
LB: loop body
LE: loop exit
PB: predicated region body
PF: predicated region fallthrough
CT: control target
= control target key end

     0   :  { %s607_s12 = smov 0   ;;  %s609_s13 = smov 0   ;;  %s744_s0 = inlined_call_operand.vmem [shape: f32[2,144,16], index: 0, kind: input, shape index: {}]   ;;  %s745_s1 = inlined_call_operand.vmem [shape: f32[32,144], index: 1, kind: input, shape index: {}]   ;;  %s746_s2 = inlined_call_operand.vmem [shape: f32[32,1], index: 2, kind: input, shape index: {}]   ;;  %s747_s3 = inlined_call_operand.vmem [shape: f32[2,32,16], index: 3, kind: output, shape index: {}]  }
   0x1   :  { %s611_s14 = smov 0  }
   0x2 LB: > { %s25_s15 = sadd.s32 1, %s579_s13  ;;  %p477_p0 = scmp.ge.s32.totalorder %s583_s14, 1  ;;  %s583_s14 = sphi %s611_s14, %s13_s14   ;;  %s579_s13 = sphi %s609_s13, %s749_s13   ;;  %s575_s12 = sphi %s607_s12, %s748_s12  }
   0x3   : > { %p27_p1 = scmp.ge.s32.totalorder %s25_s15, 2  ;;  %p156_p2 = scmp.lt.s32.totalorder %s583_s14, 3 }
   0x5   : > { %s751_s15 = smov (%p27_p1, %s25_s15), 0  ;;  %p157_p3 = pnand %p477_p0, %p156_p2 }
   0x6   : > { %p186_p4 = scmp.lt.s32.totalorder (!%p157_p3), %s575_s12, 1 }
   0x7   : > { %160 = sbr.rel (%p157_p3) target bundleno = 281 (0x119), region = 32 }
   0xc   : > { %v203_v0 = vld [vmem:[%s745_s1 + $0x8] sm:$0xff]  ;;  %vm252_vm0 = vcmask 130048   ;;  %v585_v2 = vmov 0.0   ;;  %s753_s12 = smov (!%p186_p4, %s575_s12), 1  ;;  %v230_v3 = vld [vmem:[%s746_s2 + $0x10] sm:$0xff]  ;;  %v586_v4 = vmov 0  }
   0xd   : > { %v207_v1 = vld [vmem:[%s745_s1 + $0x28] sm:$0xff]  ;;  %265 = vmatprep.subr.mxu0 %v585_v2  ;;  %488 = vmatprep.subr.mxu1 %v585_v2  ;;  %v228_v5 = vld [vmem:[%s746_s2] sm:$0xff]  ;;  %s524_s24 = smul.u32 144, %s753_s12  ;;  %v205_v26 = vld [vmem:[%s745_s1 + $0x18] sm:$0xff]  ;;  %s487_s21 = sshll.u32 %s753_s12, 5 }
   0xe   : > { %481 = vmatprep.mubr.msk.f32.mxu0 %vm252_vm0, %v203_v0  ;;  %483 = vmatprep.mubr.msk.f32.mxu1 %vm252_vm0, %v207_v1  ;;  %v202_v24 = vld [vmem:[%s745_s1] sm:$0xff]  ;;  %v209_v27 = vld [vmem:[%s745_s1 + $0x38] sm:$0xff]  ;;  %v229_v29 = vld [vmem:[%s746_s2 + $0x8] sm:$0xff] }
   0xf   : > { %552 = vset.pattern.permute.xlu1 %v586_v4  ;;  %551 = vset.pattern.permute.xlu0 %v586_v4  ;;  %s647_s27 = scalar_lea.vmem %s744_s0, %s524_s24  ;;  %v206_v25 = vld [vmem:[%s745_s1 + $0x20] sm:$0xff]  ;;  %v231_v28 = vld [vmem:[%s746_s2 + $0x18] sm:$0xff]  ;;  %v204_v30 = vld [vmem:[%s745_s1 + $0x10] sm:$0xff]  ;;  %s201_s24 = scalar_lea.vmem %s747_s3, %s487_s21 }
  0x10   : > { %244 = vperm.xlu1 %552, %v230_v3   ;;  %234 = vperm.xlu0 %551, %v228_v5   ;;  %v225_v6 = vld [vmem:[%s647_s27 + $0x78] sm:$0xff]  ;;  %v224_v7 = vld [vmem:[%s647_s27 + $0x70] sm:$0xff]  ;;  %v223_v8 = vld [vmem:[%s647_s27 + $0x68] sm:$0xff] }
  0x11   : > { %266 = vmatpush1.msra.mxu0 %v225_v6  ;;  %506 = vmatpush1.msra.mxu1 %v225_v6  ;;  %v222_v9 = vld [vmem:[%s647_s27 + $0x60] sm:$0xff]  ;;  %v221_v10 = vld [vmem:[%s647_s27 + $0x58] sm:$0xff]  ;;  %v220_v11 = vld [vmem:[%s647_s27 + $0x50] sm:$0xff] }
  0x12   : > { %267 = vmatprep.subr.mxu0 %v585_v2  ;;  %489 = vmatprep.subr.mxu1 %v585_v2  ;;  %v219_v12 = vld [vmem:[%s647_s27 + $0x48] sm:$0xff]  ;;  %v218_v13 = vld [vmem:[%s647_s27 + $0x40] sm:$0xff]  ;;  %v217_v14 = vld [vmem:[%s647_s27 + $0x38] sm:$0xff] }
  0x13   : > { %268 = vmatpush1.msra.mxu0 %v224_v7  ;;  %507 = vmatpush1.msra.mxu1 %v224_v7  ;;  %v216_v15 = vld [vmem:[%s647_s27 + $0x30] sm:$0xff]  ;;  %v215_v16 = vld [vmem:[%s647_s27 + $0x28] sm:$0xff]  ;;  %v214_v17 = vld [vmem:[%s647_s27 + $0x20] sm:$0xff] }
  0x14   : > { %269 = vmatprep.subr.mxu0 %v585_v2  ;;  %490 = vmatprep.subr.mxu1 %v585_v2  ;;  %v213_v18 = vld [vmem:[%s647_s27 + $0x18] sm:$0xff]  ;;  %v212_v19 = vld [vmem:[%s647_s27 + $0x10] sm:$0xff]  ;;  %v211_v20 = vld [vmem:[%s647_s27 + $0x8] sm:$0xff] }
  0x15   : > { %270 = vmatpush1.msra.mxu0 %v223_v8  ;;  %508 = vmatpush1.msra.mxu1 %v223_v8  ;;  %v210_v21 = vld [vmem:[%s647_s27] sm:$0xff]  ;;  %v227_v22 = vld [vmem:[%s647_s27 + $0x88] sm:$0xff]  ;;  %v208_v31 = vld [vmem:[%s745_s1 + $0x30] sm:$0xff] }
  0x16   : > { %271 = vmatprep.subr.mxu0 %v585_v2  ;;  %491 = vmatprep.subr.mxu1 %v585_v2  ;;  %v226_v23 = vld [vmem:[%s647_s27 + $0x80] sm:$0xff] }
  0x17   : > { %272 = vmatpush1.msra.mxu0 %v222_v9  ;;  %509 = vmatpush1.msra.mxu1 %v222_v9 }
  0x18   : > { %273 = vmatprep.subr.mxu0 %v585_v2  ;;  %492 = vmatprep.subr.mxu1 %v585_v2 }
  0x19   : > { %274 = vmatpush1.msra.mxu0 %v221_v10  ;;  %510 = vmatpush1.msra.mxu1 %v221_v10 }
  0x1a   : > { %275 = vmatprep.subr.mxu0 %v585_v2  ;;  %493 = vmatprep.subr.mxu1 %v585_v2 }
  0x1b   : > { %276 = vmatpush1.msra.mxu0 %v220_v11  ;;  %511 = vmatpush1.msra.mxu1 %v220_v11 }
  0x1c   : > { %277 = vmatprep.subr.mxu0 %v585_v2  ;;  %494 = vmatprep.subr.mxu1 %v585_v2 }
  0x1d   : > { %278 = vmatpush1.msra.mxu0 %v219_v12  ;;  %512 = vmatpush1.msra.mxu1 %v219_v12 }
  0x1e   : > { %279 = vmatprep.subr.mxu0 %v585_v2  ;;  %495 = vmatprep.subr.mxu1 %v585_v2 }
  0x1f   : > { %280 = vmatpush1.msra.mxu0 %v218_v13  ;;  %513 = vmatpush1.msra.mxu1 %v218_v13 }
  0x20   : > { %281 = vmatprep.subr.mxu0 %v585_v2  ;;  %496 = vmatprep.subr.mxu1 %v585_v2 }
  0x21   : > { %282 = vmatpush1.msra.mxu0 %v217_v14  ;;  %514 = vmatpush1.msra.mxu1 %v217_v14 }
  0x22   : > { %283 = vmatprep.subr.mxu0 %v585_v2  ;;  %497 = vmatprep.subr.mxu1 %v585_v2 }
  0x23   : > { %284 = vmatpush1.msra.mxu0 %v216_v15  ;;  %515 = vmatpush1.msra.mxu1 %v216_v15 }
  0x24   : > { %285 = vmatprep.subr.mxu0 %v585_v2  ;;  %498 = vmatprep.subr.mxu1 %v585_v2 }
  0x25   : > { %286 = vmatpush1.msra.mxu0 %v215_v16  ;;  %516 = vmatpush1.msra.mxu1 %v215_v16 }
  0x26   : > { %287 = vmatprep.subr.mxu0 %v585_v2  ;;  %499 = vmatprep.subr.mxu1 %v585_v2 }
  0x27   : > { %288 = vmatpush1.msra.mxu0 %v214_v17  ;;  %517 = vmatpush1.msra.mxu1 %v214_v17 }
  0x28   : > { %289 = vmatprep.subr.mxu0 %v585_v2  ;;  %500 = vmatprep.subr.mxu1 %v585_v2 }
  0x29   : > { %290 = vmatpush1.msra.mxu0 %v213_v18  ;;  %518 = vmatpush1.msra.mxu1 %v213_v18 }
  0x2a   : > { %291 = vmatprep.subr.mxu0 %v585_v2  ;;  %501 = vmatprep.subr.mxu1 %v585_v2 }
  0x2b   : > { %292 = vmatpush1.msra.mxu0 %v212_v19  ;;  %519 = vmatpush1.msra.mxu1 %v212_v19 }
  0x2c   : > { %293 = vmatprep.subr.mxu0 %v585_v2  ;;  %502 = vmatprep.subr.mxu1 %v585_v2 }
  0x2d   : > { %294 = vmatpush1.msra.mxu0 %v211_v20  ;;  %520 = vmatpush1.msra.mxu1 %v211_v20 }
  0x2e   : > { %295 = vmatprep.subr.mxu0 %v585_v2  ;;  %503 = vmatprep.subr.mxu1 %v585_v2 }
  0x2f   : > { %296 = vmatpush1.msra.mxu0 %v210_v21  ;;  %521 = vmatpush1.msra.mxu1 %v210_v21 }
  0x30   : > { %325 = vmatprep.subr.mxu0 %v585_v2  ;;  %504 = vmatprep.subr.mxu1 %v585_v2 }
  0x31   : > { %326 = vmatpush2.msra.mxu0 %v227_v22  ;;  %522 = vmatpush2.msra.mxu1 %v227_v22 }
  0x32   : > { %327 = vmatprep.subr.mxu0 %v585_v2  ;;  %505 = vmatprep.subr.mxu1 %v585_v2 }
  0x33   : > { %328 = vmatpush2.msra.mxu0 %v226_v23  ;;  %523 = vmatpush2.msra.mxu1 %v226_v23 }
  0x34   : > { %330 = vmatmul.mubr.f32.vlgmr.msra.gmra.mxu0 %v202_v24  ;;  %340 = vmatmul.mubr.f32.vlgmr.msra.gmra.mxu1 %v206_v25 }
  0x35   : > { %482 = vmatprep.mubr.msk.f32.mxu0 %vm252_vm0, %v205_v26  ;;  %484 = vmatprep.mubr.msk.f32.mxu1 %vm252_vm0, %v209_v27 }
  0x36   : > { %249 = vperm.xlu1 %552, %v231_v28   ;;  %239 = vperm.xlu0 %551, %v229_v29  }
  0x38   : > { %335 = vmatmul.mubr.f32.gmra.mxu0 %v204_v30  ;;  %345 = vmatmul.mubr.f32.gmra.mxu1 %v208_v31 }
  0x8b   : > { %v245_v32 = vpop.permute.xlu1 %244  ;;  %v235_v33 = vpop.permute.xlu0 %234 }
  0xb1   : > { %v250_v40 = vpop.permute.xlu1 %249  ;;  %v240_v41 = vpop.permute.xlu0 %239 }
  0xf4   : > { %v331_v34 = vpop.f32.mrf.mxu0  ;;  %v341_v35 = vpop.f32.mrf.mxu1 }
  0xf5   : > { %v332_v36 = vadd.f32 %v331_v34, %v235_v33  ;;  %v342_v37 = vadd.f32 %v341_v35, %v245_v32 }
  0xf6   : > { %v333_v38 = vpop.f32.mrf.mxu0  ;;  %v343_v39 = vpop.f32.mrf.mxu1 }
  0xf7   : > { %v354_v42 = vmul.f32 %v332_v36, %v332_v36  ;;  %v356_v43 = vmul.f32 %v342_v37, %v342_v37  ;;  %v350_v6 = vmul.f32 0.5, %v332_v36  ;;  %v352_v8 = vmul.f32 0.5, %v342_v37 }
  0xf8   : > { %v336_v44 = vpop.f32.mrf.mxu0  ;;  %v346_v45 = vpop.f32.mrf.mxu1 }
  0xf9   : > { %v358_v46 = vmul.f32 %v354_v42, %v332_v36  ;;  %v360_v47 = vmul.f32 %v356_v43, %v342_v37  ;;  %v337_v48 = vadd.f32 %v336_v44, %v240_v41  ;;  %v347_v49 = vadd.f32 %v346_v45, %v250_v40 }
  0xfa   : > { %v338_v50 = vpop.f32.mrf.mxu0  ;;  %v348_v51 = vpop.f32.mrf.mxu1 }
  0xfb   : > { %v362_v52 = vmul.f32 0.044715, %v358_v46  ;;  %v364_v53 = vmul.f32 0.044715, %v360_v47  ;;  %v355_v54 = vmul.f32 %v337_v48, %v337_v48  ;;  %v357_v55 = vmul.f32 %v347_v49, %v347_v49 }
  0xfc   : > { %v351_v14 = vmul.f32 0.5, %v337_v48  ;;  %v353_v16 = vmul.f32 0.5, %v347_v49 }
  0xfd   : > { %v366_v56 = vadd.f32 %v362_v52, %v332_v36  ;;  %v368_v57 = vadd.f32 %v364_v53, %v342_v37  ;;  %v359_v58 = vmul.f32 %v355_v54, %v337_v48  ;;  %v361_v59 = vmul.f32 %v357_v55, %v347_v49 }
  0xff   : > { %v370_v60 = vmul.f32 0.7978846, %v366_v56  ;;  %v372_v61 = vmul.f32 0.7978846, %v368_v57  ;;  %v363_v62 = vmul.f32 0.044715, %v359_v58 }
 0x100   : > { %v365_v63 = vmul.f32 0.044715, %v361_v59 }
 0x101   : > { %553 = vtanh.f32 %v370_v60  ;;  %v367_v0 = vadd.f32 %v363_v62, %v337_v48 }
 0x102   : > { %555 = vtanh.f32 %v372_v61  ;;  %v369_v1 = vadd.f32 %v365_v63, %v347_v49 }
 0x103   : > { %v371_v2 = vmul.f32 0.7978846, %v367_v0 }
 0x104   : > { %v373_v3 = vmul.f32 0.7978846, %v369_v1 }
 0x105   : > { %557 = vtanh.f32 %v371_v2 }
 0x106   : > { %559 = vtanh.f32 %v373_v3 }
 0x10e   : > { %v554_v4 = vpop.eup %553 }
 0x10f   : > { %v556_v5 = vpop.eup %555  ;;  %v378_v7 = vadd.f32 1.0, %v554_v4 }
 0x110   : > { %v380_v9 = vadd.f32 1.0, %v556_v5 }
 0x111   : > { %v382_v10 = vmul.f32 %v378_v7, %v350_v6 }
 0x112   : > { %v558_v11 = vpop.eup %557  ;;  %v384_v12 = vmul.f32 %v380_v9, %v352_v8 }
 0x113   : > { %v560_v13 = vpop.eup %559  ;;  %386 = vst.msk [vmem:[%s201_s24] sm:$0xff] %vm252_vm0, %v382_v10  ;;  %v379_v15 = vadd.f32 1.0, %v558_v11 }
 0x114   : > { %388 = vst.msk [vmem:[%s201_s24 + $0x10] sm:$0xff] %vm252_vm0, %v384_v12  ;;  %v381_v17 = vadd.f32 1.0, %v560_v13 }
 0x115   : > { %v383_v18 = vmul.f32 %v379_v15, %v351_v14 }
 0x116   : > { %v385_v19 = vmul.f32 %v381_v17, %v353_v16 }
 0x117   : > { %387 = vst.msk [vmem:[%s201_s24 + $0x8] sm:$0xff] %vm252_vm0, %v383_v18 }
 0x118   : > { %389 = vst.msk [vmem:[%s201_s24 + $0x18] sm:$0xff] %vm252_vm0, %v385_v19 }
 0x119 PF: > { %s13_s14 = sadd.s32 1, %s583_s14   ;;  %s748_s12 = smov %s579_s13 }
 0x11a   : > { %p10_p5 = scmp.ge.s32.totalorder %s13_s14, 4   ;;  %s749_s13 = smov %s751_s15 }
 0x11c   :  { %12 = sbr.rel (!%p10_p5) target bundleno = 2 (0x2), region = 62 }

// kernel: patch_embed_forward.7
= control target key start
LH: loop header
LB: loop body
LE: loop exit
PB: predicated region body
PF: predicated region fallthrough
CT: control target
= control target key end

     0   :  { %s699_s12 = smov 0   ;;  %s701_s13 = smov 0   ;;  %s830_s0 = inlined_call_operand.vmem [shape: f32[2,288,16], index: 0, kind: input, shape index: {}]   ;;  %s831_s1 = inlined_call_operand.vmem [shape: f32[32,288], index: 1, kind: input, shape index: {}]   ;;  %s832_s2 = inlined_call_operand.vmem [shape: f32[32,1], index: 2, kind: input, shape index: {}]   ;;  %s833_s3 = inlined_call_operand.vmem [shape: f32[2,32,16], index: 3, kind: output, shape index: {}]  }
   0x1   :  { %s703_s14 = smov 0  }
   0x2 LB: > { %s25_s15 = sadd.s32 1, %s672_s13  ;;  %p549_p0 = scmp.ge.s32.totalorder %s676_s14, 1  ;;  %s676_s14 = sphi %s703_s14, %s13_s14   ;;  %s672_s13 = sphi %s701_s13, %s835_s13   ;;  %s668_s12 = sphi %s699_s12, %s834_s12  }
   0x3   : > { %p27_p1 = scmp.ge.s32.totalorder %s25_s15, 2  ;;  %p156_p2 = scmp.lt.s32.totalorder %s676_s14, 3 }
   0x5   : > { %s837_s15 = smov (%p27_p1, %s25_s15), 0  ;;  %p157_p3 = pnand %p549_p0, %p156_p2 }
   0x6   : > { %p186_p4 = scmp.lt.s32.totalorder (!%p157_p3), %s668_s12, 1 }
   0x7   : > { %160 = sbr.rel (%p157_p3) target bundleno = 263 (0x107), region = 32 }
   0xc   : > { %v203_v0 = vld [vmem:[%s831_s1 + $0x8] sm:$0xff]  ;;  %vm274_vm0 = vcmask 261120   ;;  %v204_v1 = vld [vmem:[%s831_s1 + $0x10] sm:$0xff]  ;;  %v678_v2 = vmov 0   ;;  %s839_s12 = smov (!%p186_p4, %s668_s12), 1  ;;  %v250_v3 = vld [vmem:[%s832_s2] sm:$0xff] }
   0xd   : > { %351 = vmatprep.mubr.f32.mxu0 %v203_v0  ;;  %652 = vset.pattern.permute.xlu0 %v678_v2  ;;  %s626_s20 = smul.u32 288, %s839_s12  ;;  %v252_v4 = vld [vmem:[%s832_s2 + $0x10] sm:$0xff]  ;;  %v251_v5 = vld [vmem:[%s832_s2 + $0x8] sm:$0xff]  ;;  %v253_v6 = vld [vmem:[%s832_s2 + $0x18] sm:$0xff]  ;;  %s559_s29 = sshll.u32 %s839_s12, 5  ;;  %vm457_vm1 = vcmask 130048  }
   0xe   : > { %620 = vmatprep.mubr.msk.f32.mxu1 %vm274_vm0, %v204_v1  ;;  %653 = vset.pattern.permute.xlu1 %v678_v2  ;;  %v207_v29 = vld [vmem:[%s831_s1 + $0x28] sm:$0xff]  ;;  %v210_v31 = vld [vmem:[%s831_s1 + $0x40] sm:$0xff]  ;;  %v213_v35 = vld [vmem:[%s831_s1 + $0x58] sm:$0xff]  ;;  %s201_s5 = scalar_lea.vmem %s833_s3, %s559_s29 }
   0xf   : > { %256 = vperm.xlu0 %652, %v250_v3   ;;  %266 = vperm.xlu1 %653, %v252_v4   ;;  %s736_s27 = scalar_lea.vmem %s830_s0, %s626_s20  ;;  %v202_v46 = vld [vmem:[%s831_s1] sm:$0xff]  ;;  %v205_v48 = vld [vmem:[%s831_s1 + $0x18] sm:$0xff]  ;;  %v208_v50 = vld [vmem:[%s831_s1 + $0x30] sm:$0xff] }
  0x10   : > { %v245_v7 = vld [vmem:[%s736_s27 + $0xf8] sm:$0xff]  ;;  %v244_v9 = vld [vmem:[%s736_s27 + $0xf0] sm:$0xff]  ;;  %v243_v11 = vld [vmem:[%s736_s27 + $0xe8] sm:$0xff] }
  0x11   : > { %v229_v8 = vld [vmem:[%s736_s27 + $0x78] sm:$0xff]  ;;  %560 = vmatprep.subr.mxu0 %v245_v7  ;;  %v228_v10 = vld [vmem:[%s736_s27 + $0x70] sm:$0xff]  ;;  %v227_v12 = vld [vmem:[%s736_s27 + $0x68] sm:$0xff] }
  0x12   : > { %561 = vmatpush3.msra.mxu0 %v229_v8  ;;  %v242_v13 = vld [vmem:[%s736_s27 + $0xe0] sm:$0xff]  ;;  %v241_v15 = vld [vmem:[%s736_s27 + $0xd8] sm:$0xff]  ;;  %v240_v17 = vld [vmem:[%s736_s27 + $0xd0] sm:$0xff] }
  0x13   : > { %261 = vperm.xlu0 %652, %v251_v5   ;;  %562 = vmatprep.subr.mxu0 %v244_v9  ;;  %v226_v14 = vld [vmem:[%s736_s27 + $0x60] sm:$0xff]  ;;  %v225_v16 = vld [vmem:[%s736_s27 + $0x58] sm:$0xff]  ;;  %v224_v18 = vld [vmem:[%s736_s27 + $0x50] sm:$0xff] }
  0x14   : > { %271 = vperm.xlu1 %653, %v253_v6   ;;  %563 = vmatpush3.msra.mxu0 %v228_v10  ;;  %v249_v19 = vld [vmem:[%s736_s27 + $0x118] sm:$0xff]  ;;  %v239_v20 = vld [vmem:[%s736_s27 + $0xc8] sm:$0xff]  ;;  %v248_v21 = vld [vmem:[%s736_s27 + $0x110] sm:$0xff] }
  0x15   : > { %564 = vmatprep.subr.mxu0 %v243_v11  ;;  %612 = vmatprep.subr.mxu1 %v249_v19  ;;  %v223_v22 = vld [vmem:[%s736_s27 + $0x48] sm:$0xff]  ;;  %v238_v24 = vld [vmem:[%s736_s27 + $0xc0] sm:$0xff]  ;;  %v237_v27 = vld [vmem:[%s736_s27 + $0xb8] sm:$0xff] }
  0x16   : > { %565 = vmatpush3.msra.mxu0 %v227_v12  ;;  %613 = vmatpush3.msra.mxu1 %v249_v19  ;;  %v247_v23 = vld [vmem:[%s736_s27 + $0x108] sm:$0xff]  ;;  %v222_v25 = vld [vmem:[%s736_s27 + $0x40] sm:$0xff]  ;;  %v221_v28 = vld [vmem:[%s736_s27 + $0x38] sm:$0xff] }
  0x17   : > { %566 = vmatprep.subr.mxu0 %v242_v13  ;;  %614 = vmatprep.subr.mxu1 %v248_v21  ;;  %v246_v26 = vld [vmem:[%s736_s27 + $0x100] sm:$0xff]  ;;  %v236_v30 = vld [vmem:[%s736_s27 + $0xb0] sm:$0xff]  ;;  %v235_v33 = vld [vmem:[%s736_s27 + $0xa8] sm:$0xff] }
  0x18   : > { %567 = vmatpush3.msra.mxu0 %v226_v14  ;;  %615 = vmatpush3.msra.mxu1 %v248_v21  ;;  %v220_v32 = vld [vmem:[%s736_s27 + $0x30] sm:$0xff]  ;;  %v219_v34 = vld [vmem:[%s736_s27 + $0x28] sm:$0xff]  ;;  %v234_v36 = vld [vmem:[%s736_s27 + $0xa0] sm:$0xff] }
  0x19   : > { %568 = vmatprep.subr.mxu0 %v241_v15  ;;  %616 = vmatprep.subr.mxu1 %v247_v23  ;;  %v218_v37 = vld [vmem:[%s736_s27 + $0x20] sm:$0xff]  ;;  %v233_v38 = vld [vmem:[%s736_s27 + $0x98] sm:$0xff]  ;;  %v232_v40 = vld [vmem:[%s736_s27 + $0x90] sm:$0xff] }
  0x1a   : > { %569 = vmatpush3.msra.mxu0 %v225_v16  ;;  %617 = vmatpush3.msra.mxu1 %v247_v23  ;;  %v217_v39 = vld [vmem:[%s736_s27 + $0x18] sm:$0xff]  ;;  %v216_v41 = vld [vmem:[%s736_s27 + $0x10] sm:$0xff]  ;;  %v231_v42 = vld [vmem:[%s736_s27 + $0x88] sm:$0xff] }
  0x1b   : > { %570 = vmatprep.subr.mxu0 %v240_v17  ;;  %618 = vmatprep.subr.mxu1 %v246_v26  ;;  %v215_v43 = vld [vmem:[%s736_s27 + $0x8] sm:$0xff]  ;;  %v230_v44 = vld [vmem:[%s736_s27 + $0x80] sm:$0xff]  ;;  %v209_v49 = vld [vmem:[%s831_s1 + $0x38] sm:$0xff] }
  0x1c   : > { %571 = vmatpush3.msra.mxu0 %v224_v18  ;;  %619 = vmatpush3.msra.mxu1 %v246_v26  ;;  %v214_v45 = vld [vmem:[%s736_s27] sm:$0xff]  ;;  %v212_v51 = vld [vmem:[%s831_s1 + $0x50] sm:$0xff]  ;;  %v211_v52 = vld [vmem:[%s831_s1 + $0x48] sm:$0xff] }
  0x1d   : > { %572 = vmatprep.subr.mxu0 %v239_v20  ;;  %621 = vmatmul.mubr.msk.f32.vlgmr.msra.gmra.mxu1 %vm274_vm0, %v207_v29  ;;  %v206_v47 = vld [vmem:[%s831_s1 + $0x20] sm:$0xff] }
  0x1e   : > { %573 = vmatpush3.msra.mxu0 %v223_v22  ;;  %623 = vmatprep.mubr.msk.f32.mxu1 %vm274_vm0, %v210_v31 }
  0x1f   : > { %574 = vmatprep.subr.mxu0 %v238_v24 }
  0x20   : > { %575 = vmatpush3.msra.mxu0 %v222_v25 }
  0x21   : > { %576 = vmatprep.subr.mxu0 %v237_v27  ;;  %624 = vmatmul.mubr.msk.f32.gmra.mxu1 %vm274_vm0, %v213_v35 }
  0x22   : > { %577 = vmatpush3.msra.mxu0 %v221_v28 }
  0x23   : > { %578 = vmatprep.subr.mxu0 %v236_v30 }
  0x24   : > { %579 = vmatpush3.msra.mxu0 %v220_v32 }
  0x25   : > { %580 = vmatprep.subr.mxu0 %v235_v33 }
  0x26   : > { %581 = vmatpush3.msra.mxu0 %v219_v34 }
  0x27   : > { %582 = vmatprep.subr.mxu0 %v234_v36 }
  0x28   : > { %583 = vmatpush3.msra.mxu0 %v218_v37 }
  0x29   : > { %584 = vmatprep.subr.mxu0 %v233_v38 }
  0x2a   : > { %585 = vmatpush3.msra.mxu0 %v217_v39 }
  0x2b   : > { %586 = vmatprep.subr.mxu0 %v232_v40 }
  0x2c   : > { %587 = vmatpush3.msra.mxu0 %v216_v41 }
  0x2d   : > { %588 = vmatprep.subr.mxu0 %v231_v42 }
  0x2e   : > { %589 = vmatpush3.msra.mxu0 %v215_v43 }
  0x2f   : > { %590 = vmatprep.subr.mxu0 %v230_v44 }
  0x30   : > { %591 = vmatpush3.msra.mxu0 %v214_v45 }
  0x31   : > { %352 = vmatmul.mubr.f32.vlgmr.msra.gmra.mxu0 %v202_v46 }
  0x32   : > { %356 = vmatprep.mubr.f32.mxu0 %v206_v47 }
  0x35   : > { %357 = vmatmul.mubr.f32.gmra.mxu0 %v205_v48 }
  0x36   : > { %361 = vmatprep.mubr.f32.mxu0 %v209_v49 }
  0x39   : > { %362 = vmatmul.mubr.f32.gmra.mxu0 %v208_v50 }
  0x3a   : > { %366 = vmatprep.mubr.f32.mxu0 %v212_v51 }
  0x3d   : > { %367 = vmatmul.mubr.f32.gmra.mxu0 %v211_v52 }
  0x8a   : > { %v257_v53 = vpop.permute.xlu0 %256  ;;  %v267_v4 = vpop.permute.xlu1 %266 }
  0x8e   : > { %v262_v62 = vpop.permute.xlu0 %261 }
  0x8f   : > { %v272_v14 = vpop.permute.xlu1 %271 }
  0xdd   : > { %v622_v55 = vpop.f32.mrf.mxu1 }
  0xdf   : > { %v438_v59 = vpop.f32.mrf.mxu1 }
  0xe1   : > { %v625_v2 = vpop.f32.mrf.mxu1 }
  0xe3   : > { %v448_v9 = vpop.f32.mrf.mxu1 }
  0xf1   : > { %v592_v54 = vpop.f32.mrf.mxu0 }
  0xf3   : > { %v593_v56 = vpop.f32.mrf.mxu0 }
  0xf4   : > { %v594_v57 = vadd.f32 %v593_v56, %v592_v54 }
  0xf5   : > { %v595_v58 = vpop.f32.mrf.mxu0 }
  0xf6   : > { %v354_v60 = vadd.f32 %v594_v57, %v257_v53 }
  0xf7   : > { %v596_v61 = vpop.f32.mrf.mxu0 }
  0xf8   : > { %v597_v63 = vadd.f32 %v596_v61, %v595_v58  ;;  %v439_v0 = vadd.f32 %v438_v59, %v354_v60 }
  0xf9   : > { %v598_v1 = vpop.f32.mrf.mxu0 }
  0xfa   : > { %458 = vst.msk [vmem:[%s201_s5] sm:$0xff] %vm457_vm1, %v439_v0  ;;  %v359_v3 = vadd.f32 %v597_v63, %v262_v62 }
  0xfb   : > { %v599_v5 = vpop.f32.mrf.mxu0 }
  0xfc   : > { %v444_v6 = vadd.f32 %v622_v55, %v359_v3  ;;  %v600_v7 = vadd.f32 %v599_v5, %v598_v1 }
  0xfd   : > { %v601_v8 = vpop.f32.mrf.mxu0 }
  0xfe   : > { %459 = vst.msk [vmem:[%s201_s5 + $0x8] sm:$0xff] %vm457_vm1, %v444_v6  ;;  %v364_v10 = vadd.f32 %v600_v7, %v267_v4 }
  0xff   : > { %v602_v11 = vpop.f32.mrf.mxu0 }
 0x100   : > { %v603_v12 = vadd.f32 %v602_v11, %v601_v8  ;;  %v449_v13 = vadd.f32 %v448_v9, %v364_v10 }
 0x102   : > { %v369_v15 = vadd.f32 %v603_v12, %v272_v14  ;;  %460 = vst.msk [vmem:[%s201_s5 + $0x10] sm:$0xff] %vm457_vm1, %v449_v13 }
 0x104   : > { %v454_v16 = vadd.f32 %v625_v2, %v369_v15 }
 0x106   : > { %461 = vst.msk [vmem:[%s201_s5 + $0x18] sm:$0xff] %vm457_vm1, %v454_v16 }
 0x107 PF: > { %s13_s14 = sadd.s32 1, %s676_s14   ;;  %s834_s12 = smov %s672_s13 }
 0x108   : > { %p10_p5 = scmp.ge.s32.totalorder %s13_s14, 4   ;;  %s835_s13 = smov %s837_s15 }
 0x10a   :  { %12 = sbr.rel (!%p10_p5) target bundleno = 2 (0x2), region = 62 }

</bundles_post_ra>
